<compile_context>
chip_gen: v7x
topology: tpu7x:2x2x1
jax: 0.10.0
libtpu: 0.0.40
codegen_flags: <defaults>
</compile_context>

<pallas_src>
import numpy as np
import jax
import jax.numpy as jnp
from jax import lax
from jax.experimental import pallas as pl
from jax.experimental.pallas import tpu as pltpu


def _make_resb_kernel(C, Cc, fpb, H, W):
    HW = H * W
    CT = fpb * C          # rows of the input / output block (packed frames)
    R = fpb * Cc          # rows of the body tensors

    sh_up = W % HW        # read row r-1  (di = 0)
    sh_dn = (HW - W) % HW # read row r+1  (di = 2)
    sh_lt = 1 % HW        # read col c-1  (dj = 0)
    sh_rt = (HW - 1) % HW # read col c+1  (dj = 2)

    def _roll(v, s):
        return v if s == 0 else pltpu.roll(v, s, axis=1)

    def kernel(x_ref, w1_ref, wdw_ref, wsh_ref, aux_ref, out_ref):
        # x_ref  : (1, CT, HW)   fpb NCHW frames, channels stacked, HW in lanes
        # w1_ref : (R, CT)       conv1 weight fused with the x[:, Cc:] channel pick
        # wdw_ref: (R, 9)        depthwise 3x3 weights, tap k = di*3 + dj
        # wsh_ref: (CT, CT + R)  conv3 weight fused with cat + channel_shuffle(2)
        # aux_ref: (4, HW)       masks: not_top / not_bot / not_left / not_right
        # out_ref: (1, CT, HW)
        x = x_ref[0].astype(jnp.float32)                          # (CT, HW)

        m = aux_ref[...]
        not_top = m[0:1, :] != 0.0
        not_bot = m[1:2, :] != 0.0
        not_left = m[2:3, :] != 0.0
        not_right = m[3:4, :] != 0.0

        # ---- 1x1 conv #1 + LeakyReLU(0.1) (channel selection folded into W) --
        y = jnp.dot(w1_ref[...], x, preferred_element_type=jnp.float32)  # (R, HW)
        y = jnp.maximum(y, 0.1 * y)

        # ---- depthwise 3x3, stride 1, pad 1: in-register rolls + grouped masks
        wdw = wdw_ref[...]                                        # (R, 9)
        y_up = jnp.where(not_top, _roll(y, sh_up), 0.0)           # row r-1, 0 at top
        y_dn = jnp.where(not_bot, _roll(y, sh_dn), 0.0)           # row r+1, 0 at bottom

        def col_sum(dj):                                          # sum over di, fixed dj
            return (y_up * wdw[:, dj:dj + 1]
                    + y * wdw[:, 3 + dj:4 + dj]
                    + y_dn * wdw[:, 6 + dj:7 + dj])

        acc = col_sum(1)
        acc = acc + jnp.where(not_left, _roll(col_sum(0), sh_lt), 0.0)
        acc = acc + jnp.where(not_right, _roll(col_sum(2), sh_rt), 0.0)

        # ---- 1x1 conv #2 fused with cat + channel_shuffle(groups=2) ----------
        # Even output rows copy x1 (identity columns), odd rows get w3 @ acc;
        # LeakyReLU is then applied to the odd rows only.
        stacked = jnp.concatenate([x, acc], axis=0)               # (CT + R, HW)
        pre = jnp.dot(wsh_ref[...], stacked, preferred_element_type=jnp.float32)
        row = lax.broadcasted_iota(jnp.int32, (CT, HW), 0)
        odd = jnp.bitwise_and(row, 1) == 1
        out = jnp.where(odd, jnp.maximum(pre, 0.1 * pre), pre)
        out_ref[0] = out.astype(out_ref.dtype)

    return kernel


def resb_forward(x, w1, wdw, w3):
    """ResB forward. x: (N, C, H, W) NCHW. Returns NCHW, same dtype."""
    N, C, H, W = x.shape
    assert C % 2 == 0, "ResB needs an even channel count"
    Cc = C // 2
    HW = H * W
    f32 = jnp.float32

    # Pack frames per grid step so the body tensors fill the 8-sublane f32 tile.
    fpb = 1 if Cc >= 8 else max(1, 8 // Cc)
    fpb = max(1, min(fpb, N))
    n_pad = ((N + fpb - 1) // fpb) * fpb

    x_flat = x.reshape(N, C, HW)                          # free reshape (NCHW order)
    if n_pad != N:
        x_flat = jnp.concatenate(
            [x_flat, jnp.zeros((n_pad - N, C, HW), x.dtype)], axis=0)
    x_blk = x_flat.reshape(n_pad // fpb, fpb * C, HW)     # free reshape

    w1m = w1[:, :, 0, 0].astype(f32)                      # (Cc, Cc)
    w3m = w3[:, :, 0, 0].astype(f32)                      # (Cc, Cc)
    wdw_p = jnp.tile(wdw.reshape(Cc, 9).astype(f32), (fpb, 1))   # (fpb*Cc, 9)

    eye_f = jnp.eye(fpb, dtype=f32)
    # conv1 weight fused with "take x[:, Cc:]", block-diagonal over packed frames.
    blk1 = jnp.concatenate([jnp.zeros((Cc, Cc), f32), w1m], axis=1)   # (Cc, C)
    w1_big = jnp.kron(eye_f, blk1)                                    # (fpb*Cc, fpb*C)

    # conv3 weight fused with torch.cat + channel_shuffle(groups=2):
    #   out[2i]   = x1[i]           (identity selector on the raw input rows)
    #   out[2i+1] = (w3 @ acc)[i]
    sel = np.zeros((C, C), np.float32)
    sel[2 * np.arange(Cc), np.arange(Cc)] = 1.0
    expand = np.zeros((C, Cc), np.float32)
    expand[2 * np.arange(Cc) + 1, np.arange(Cc)] = 1.0
    w_left = jnp.kron(eye_f, jnp.asarray(sel))                        # (fpb*C, fpb*C)
    w_right = jnp.kron(eye_f, jnp.asarray(expand) @ w3m)              # (fpb*C, fpb*Cc)
    w_shuf = jnp.concatenate([w_left, w_right], axis=1)

    # Spatial boundary masks for the flattened (row-major) depthwise taps.
    pos = np.arange(HW)
    r_i, c_i = pos // W, pos % W
    aux = jnp.asarray(np.stack(
        [r_i > 0, r_i < H - 1, c_i > 0, c_i < W - 1]).astype(np.float32))  # (4, HW)

    # VMEM budget derived from the actual block size (not hardcoded).
    itemsize = jnp.dtype(x.dtype).itemsize
    blk_bytes = fpb * C * HW * itemsize
    try:
        vmem_cap = int(pltpu.get_tpu_info().vmem_capacity_bytes)
    except Exception:
        vmem_cap = 64 * 1024 * 1024
    vmem_limit = int(min(max(8 * blk_bytes + (2 << 20), 32 << 20),
                         (vmem_cap * 3) // 4))

    kernel = _make_resb_kernel(C, Cc, fpb, H, W)

    out_blk = pl.pallas_call(
        kernel,
        out_shape=jax.ShapeDtypeStruct((n_pad // fpb, fpb * C, HW), x.dtype),
        grid_spec=pltpu.PrefetchScalarGridSpec(
            num_scalar_prefetch=0,
            grid=(n_pad // fpb,),
            in_specs=[
                pl.BlockSpec((1, fpb * C, HW), lambda b: (b, 0, 0)),
                pl.BlockSpec((fpb * Cc, fpb * C), lambda b: (0, 0)),
                pl.BlockSpec((fpb * Cc, 9), lambda b: (0, 0)),
                pl.BlockSpec((fpb * C, fpb * C + fpb * Cc), lambda b: (0, 0)),
                pl.BlockSpec((4, HW), lambda b: (0, 0)),
            ],
            out_specs=pl.BlockSpec((1, fpb * C, HW), lambda b: (b, 0, 0)),
        ),
        compiler_params=pltpu.CompilerParams(
            dimension_semantics=("parallel",),
            vmem_limit_bytes=vmem_limit),
    )(x_blk, w1_big, wdw_p, w_shuf, aux)

    out = out_blk.reshape(n_pad, C, HW)[:N].reshape(N, C, H, W)
    return out


def resb_reference(x, w1, wdw, w3):
    """Pure-JAX reference matching the PyTorch module semantics exactly."""
    N, C, H, W = x.shape
    Cc = C // 2
    x1, x2 = x[:, :Cc], x[:, Cc:]
    dn = ("NCHW", "OIHW", "NCHW")
    y = lax.conv_general_dilated(x2, w1, (1, 1), "VALID", dimension_numbers=dn)
    y = jnp.where(y >= 0, y, 0.1 * y)
    y = lax.conv_general_dilated(y, wdw, (1, 1), ((1, 1), (1, 1)),
                                 dimension_numbers=dn, feature_group_count=Cc)
    y = lax.conv_general_dilated(y, w3, (1, 1), "VALID", dimension_numbers=dn)
    y = jnp.where(y >= 0, y, 0.1 * y)
    out = jnp.concatenate([x1, y], axis=1)
    out = out.reshape(N, 2, Cc, H, W).transpose(0, 2, 1, 3, 4).reshape(N, C, H, W)
    return out


if __name__ == "__main__":
    key = jax.random.PRNGKey(0)
    N, C, H, W = 2, 8, 16, 16            # ResB(channels=8) -> body width Cc = 4
    Cc = C // 2
    k_x, k1, k2, k3 = jax.random.split(key, 4)

    x = jax.random.normal(k_x, (N, C, H, W), jnp.float32)
    # Deterministic synthetic weights with the shapes implied by __init__:
    w1 = jax.random.normal(k1, (Cc, Cc, 1, 1), jnp.float32) * 0.3   # Conv2d(Cc,Cc,1), no bias
    wdw = jax.random.normal(k2, (Cc, 1, 3, 3), jnp.float32) * 0.3   # depthwise 3x3, groups=Cc
    w3 = jax.random.normal(k3, (Cc, Cc, 1, 1), jnp.float32) * 0.3   # Conv2d(Cc,Cc,1), no bias

    out = jax.jit(resb_forward)(x, w1, wdw, w3)
    out = jax.block_until_ready(out)

    ref = resb_reference(x, w1, wdw, w3)
    assert out.shape == (N, C, H, W), out.shape
    max_err = float(jnp.max(jnp.abs(out - ref)))
    assert max_err < 1e-4, f"mismatch vs reference: max_err={max_err}"
    print("KERNEL_OK")
</pallas_src>

<mosaic_0001>
module attributes {stable_mosaic.version = 11 : i64} {
  func.func @kernel(%arg0: i32, %arg1: memref<1x16x256xf32, #tpu.memory_space<vmem>>, %arg2: memref<8x16xf32, #tpu.memory_space<vmem>>, %arg3: memref<8x9xf32, #tpu.memory_space<vmem>>, %arg4: memref<16x24xf32, #tpu.memory_space<vmem>>, %arg5: memref<4x256xf32, #tpu.memory_space<vmem>>, %arg6: memref<1x16x256xf32, #tpu.memory_space<vmem>>) attributes {dimension_semantics = [#tpu.dimension_semantics<parallel>], iteration_bounds = array<i64: 1>, scalar_prefetch = 0 : i64, scratch_operands = 0 : i64, tpu.core_type = #tpu.core_type<tc>, window_params = [{transform_indices = @transform_0, window_bounds = array<i64: 1, 16, 256>}, {pipeline_mode = #tpu.pipeline_mode<synchronous>, transform_indices = @transform_1, window_bounds = array<i64: 8, 16>}, {pipeline_mode = #tpu.pipeline_mode<synchronous>, transform_indices = @transform_2, window_bounds = array<i64: 8, 9>}, {pipeline_mode = #tpu.pipeline_mode<synchronous>, transform_indices = @transform_3, window_bounds = array<i64: 16, 24>}, {pipeline_mode = #tpu.pipeline_mode<synchronous>, transform_indices = @transform_4, window_bounds = array<i64: 4, 256>}, {transform_indices = @transform_5, window_bounds = array<i64: 1, 16, 256>}]} {
    %c0 = arith.constant 0 : index
    %c0_0 = arith.constant 0 : index
    %c0_1 = arith.constant 0 : index
    %0 = vector.load %arg1[%c0, %c0_0, %c0_1] : memref<1x16x256xf32, #tpu.memory_space<vmem>>, vector<1x16x256xf32>
    %1 = vector.shape_cast %0 : vector<1x16x256xf32> to vector<16x256xf32>
    %c0_2 = arith.constant 0 : index
    %c0_3 = arith.constant 0 : index
    %2 = vector.load %arg5[%c0_2, %c0_3] : memref<4x256xf32, #tpu.memory_space<vmem>>, vector<4x256xf32>
    %3 = vector.extract_strided_slice %2 {offsets = [0, 0], sizes = [1, 256], strides = [1, 1]} : vector<4x256xf32> to vector<1x256xf32>
    %cst = arith.constant 0.000000e+00 : f32
    %4 = vector.broadcast %cst : f32 to vector<1x256xf32>
    %5 = arith.cmpf one, %3, %4 : vector<1x256xf32>
    %6 = vector.extract_strided_slice %2 {offsets = [1, 0], sizes = [1, 256], strides = [1, 1]} : vector<4x256xf32> to vector<1x256xf32>
    %cst_4 = arith.constant 0.000000e+00 : f32
    %7 = vector.broadcast %cst_4 : f32 to vector<1x256xf32>
    %8 = arith.cmpf one, %6, %7 : vector<1x256xf32>
    %9 = vector.extract_strided_slice %2 {offsets = [2, 0], sizes = [1, 256], strides = [1, 1]} : vector<4x256xf32> to vector<1x256xf32>
    %cst_5 = arith.constant 0.000000e+00 : f32
    %10 = vector.broadcast %cst_5 : f32 to vector<1x256xf32>
    %11 = arith.cmpf one, %9, %10 : vector<1x256xf32>
    %12 = vector.extract_strided_slice %2 {offsets = [3, 0], sizes = [1, 256], strides = [1, 1]} : vector<4x256xf32> to vector<1x256xf32>
    %cst_6 = arith.constant 0.000000e+00 : f32
    %13 = vector.broadcast %cst_6 : f32 to vector<1x256xf32>
    %14 = arith.cmpf one, %12, %13 : vector<1x256xf32>
    %c0_7 = arith.constant 0 : index
    %c0_8 = arith.constant 0 : index
    %15 = vector.load %arg2[%c0_7, %c0_8] : memref<8x16xf32, #tpu.memory_space<vmem>>, vector<8x16xf32>
    %cst_9 = arith.constant dense<0.000000e+00> : vector<8x256xf32>
    %16 = tpu.matmul %15, %1, %cst_9 {dimension_numbers = #tpu.dot_dimension_numbers<[1], [0], [0], [1], [0, 0, 1, 1], [], []>} : vector<8x16xf32>, vector<16x256xf32>, vector<8x256xf32> -> vector<8x256xf32>
    %cst_10 = arith.constant 1.000000e-01 : f32
    %17 = vector.broadcast %cst_10 : f32 to vector<8x256xf32>
    %18 = arith.mulf %17, %16 : vector<8x256xf32>
    %19 = arith.maximumf %16, %18 : vector<8x256xf32>
    %c0_11 = arith.constant 0 : index
    %c0_12 = arith.constant 0 : index
    %20 = vector.load %arg3[%c0_11, %c0_12] : memref<8x9xf32, #tpu.memory_space<vmem>>, vector<8x9xf32>
    %c16_i32 = arith.constant 16 : i32
    %21 = tpu.dynamic_rotate %19 by %c16_i32 dim 1 : vector<8x256xf32>, i32 -> vector<8x256xf32>
    %cst_13 = arith.constant 0.000000e+00 : f32
    %22 = vector.shape_cast %5 : vector<1x256xi1> to vector<1x256xi1>
    %23 = vector.broadcast %22 : vector<1x256xi1> to vector<8x256xi1>
    %24 = vector.broadcast %cst_13 : f32 to vector<8x256xf32>
    %25 = arith.select %23, %21, %24 : vector<8x256xi1>, vector<8x256xf32>
    %c240_i32 = arith.constant 240 : i32
    %26 = tpu.dynamic_rotate %19 by %c240_i32 dim 1 : vector<8x256xf32>, i32 -> vector<8x256xf32>
    %cst_14 = arith.constant 0.000000e+00 : f32
    %27 = vector.shape_cast %8 : vector<1x256xi1> to vector<1x256xi1>
    %28 = vector.broadcast %27 : vector<1x256xi1> to vector<8x256xi1>
    %29 = vector.broadcast %cst_14 : f32 to vector<8x256xf32>
    %30 = arith.select %28, %26, %29 : vector<8x256xi1>, vector<8x256xf32>
    %31 = vector.extract_strided_slice %20 {offsets = [0, 1], sizes = [8, 1], strides = [1, 1]} : vector<8x9xf32> to vector<8x1xf32>
    %32 = vector.broadcast %31 : vector<8x1xf32> to vector<8x256xf32>
    %33 = arith.mulf %25, %32 : vector<8x256xf32>
    %34 = vector.extract_strided_slice %20 {offsets = [0, 4], sizes = [8, 1], strides = [1, 1]} : vector<8x9xf32> to vector<8x1xf32>
    %35 = vector.broadcast %34 : vector<8x1xf32> to vector<8x256xf32>
    %36 = arith.mulf %19, %35 : vector<8x256xf32>
    %37 = arith.addf %33, %36 : vector<8x256xf32>
    %38 = vector.extract_strided_slice %20 {offsets = [0, 7], sizes = [8, 1], strides = [1, 1]} : vector<8x9xf32> to vector<8x1xf32>
    %39 = vector.broadcast %38 : vector<8x1xf32> to vector<8x256xf32>
    %40 = arith.mulf %30, %39 : vector<8x256xf32>
    %41 = arith.addf %37, %40 : vector<8x256xf32>
    %42 = vector.extract_strided_slice %20 {offsets = [0, 0], sizes = [8, 1], strides = [1, 1]} : vector<8x9xf32> to vector<8x1xf32>
    %43 = vector.broadcast %42 : vector<8x1xf32> to vector<8x256xf32>
    %44 = arith.mulf %25, %43 : vector<8x256xf32>
    %45 = vector.extract_strided_slice %20 {offsets = [0, 3], sizes = [8, 1], strides = [1, 1]} : vector<8x9xf32> to vector<8x1xf32>
    %46 = vector.broadcast %45 : vector<8x1xf32> to vector<8x256xf32>
    %47 = arith.mulf %19, %46 : vector<8x256xf32>
    %48 = arith.addf %44, %47 : vector<8x256xf32>
    %49 = vector.extract_strided_slice %20 {offsets = [0, 6], sizes = [8, 1], strides = [1, 1]} : vector<8x9xf32> to vector<8x1xf32>
    %50 = vector.broadcast %49 : vector<8x1xf32> to vector<8x256xf32>
    %51 = arith.mulf %30, %50 : vector<8x256xf32>
    %52 = arith.addf %48, %51 : vector<8x256xf32>
    %c1_i32 = arith.constant 1 : i32
    %53 = tpu.dynamic_rotate %52 by %c1_i32 dim 1 : vector<8x256xf32>, i32 -> vector<8x256xf32>
    %cst_15 = arith.constant 0.000000e+00 : f32
    %54 = vector.shape_cast %11 : vector<1x256xi1> to vector<1x256xi1>
    %55 = vector.broadcast %54 : vector<1x256xi1> to vector<8x256xi1>
    %56 = vector.broadcast %cst_15 : f32 to vector<8x256xf32>
    %57 = arith.select %55, %53, %56 : vector<8x256xi1>, vector<8x256xf32>
    %58 = arith.addf %41, %57 : vector<8x256xf32>
    %59 = vector.extract_strided_slice %20 {offsets = [0, 2], sizes = [8, 1], strides = [1, 1]} : vector<8x9xf32> to vector<8x1xf32>
    %60 = vector.broadcast %59 : vector<8x1xf32> to vector<8x256xf32>
    %61 = arith.mulf %25, %60 : vector<8x256xf32>
    %62 = vector.extract_strided_slice %20 {offsets = [0, 5], sizes = [8, 1], strides = [1, 1]} : vector<8x9xf32> to vector<8x1xf32>
    %63 = vector.broadcast %62 : vector<8x1xf32> to vector<8x256xf32>
    %64 = arith.mulf %19, %63 : vector<8x256xf32>
    %65 = arith.addf %61, %64 : vector<8x256xf32>
    %66 = vector.extract_strided_slice %20 {offsets = [0, 8], sizes = [8, 1], strides = [1, 1]} : vector<8x9xf32> to vector<8x1xf32>
    %67 = vector.broadcast %66 : vector<8x1xf32> to vector<8x256xf32>
    %68 = arith.mulf %30, %67 : vector<8x256xf32>
    %69 = arith.addf %65, %68 : vector<8x256xf32>
    %c255_i32 = arith.constant 255 : i32
    %70 = tpu.dynamic_rotate %69 by %c255_i32 dim 1 : vector<8x256xf32>, i32 -> vector<8x256xf32>
    %cst_16 = arith.constant 0.000000e+00 : f32
    %71 = vector.shape_cast %14 : vector<1x256xi1> to vector<1x256xi1>
    %72 = vector.broadcast %71 : vector<1x256xi1> to vector<8x256xi1>
    %73 = vector.broadcast %cst_16 : f32 to vector<8x256xf32>
    %74 = arith.select %72, %70, %73 : vector<8x256xi1>, vector<8x256xf32>
    %75 = arith.addf %58, %74 : vector<8x256xf32>
    %76 = tpu.concatenate %1, %75 in 0 : vector<16x256xf32>, vector<8x256xf32> -> vector<24x256xf32>
    %c0_17 = arith.constant 0 : index
    %c0_18 = arith.constant 0 : index
    %77 = vector.load %arg4[%c0_17, %c0_18] : memref<16x24xf32, #tpu.memory_space<vmem>>, vector<16x24xf32>
    %cst_19 = arith.constant dense<0.000000e+00> : vector<16x256xf32>
    %78 = tpu.matmul %77, %76, %cst_19 {dimension_numbers = #tpu.dot_dimension_numbers<[1], [0], [0], [1], [0, 0, 1, 1], [], []>} : vector<16x24xf32>, vector<24x256xf32>, vector<16x256xf32> -> vector<16x256xf32>
    %79 = tpu.iota {dimensions = array<i32: 0>} : vector<16x256xi32>
    %c1_i32_20 = arith.constant 1 : i32
    %80 = vector.broadcast %c1_i32_20 : i32 to vector<16x256xi32>
    %81 = arith.andi %79, %80 : vector<16x256xi32>
    %c1_i32_21 = arith.constant 1 : i32
    %82 = vector.broadcast %c1_i32_21 : i32 to vector<16x256xi32>
    %83 = arith.cmpi eq, %81, %82 : vector<16x256xi32>
    %cst_22 = arith.constant 1.000000e-01 : f32
    %84 = vector.broadcast %cst_22 : f32 to vector<16x256xf32>
    %85 = arith.mulf %84, %78 : vector<16x256xf32>
    %86 = arith.maximumf %78, %85 : vector<16x256xf32>
    %87 = arith.select %83, %86, %78 : vector<16x256xi1>, vector<16x256xf32>
    %c0_23 = arith.constant 0 : index
    %c0_24 = arith.constant 0 : index
    %c0_25 = arith.constant 0 : index
    %88 = vector.load %arg6[%c0_23, %c0_24, %c0_25] : memref<1x16x256xf32, #tpu.memory_space<vmem>>, vector<1x16x256xf32>
    %89 = vector.shape_cast %88 : vector<1x16x256xf32> to vector<16x256xf32>
    %90 = vector.shape_cast %87 : vector<16x256xf32> to vector<1x16x256xf32>
    tpu.vector_store %arg6[%c0_23, %c0_24, %c0_25], %90 {strides = array<i32>} : memref<1x16x256xf32, #tpu.memory_space<vmem>>, vector<1x16x256xf32>,
    return
  }
  func.func @transform_0(%arg0: i32) -> (i32, i32, i32) {
    %c0_i32 = arith.constant 0 : i32
    %c0_i32_0 = arith.constant 0 : i32
    %c0_i32_1 = arith.constant 0 : i32
    return %arg0, %c0_i32, %c0_i32_0 : i32, i32, i32
  }
  func.func @transform_1(%arg0: i32) -> (i32, i32) {
    %c0_i32 = arith.constant 0 : i32
    %c0_i32_0 = arith.constant 0 : i32
    %c0_i32_1 = arith.constant 0 : i32
    return %c0_i32, %c0_i32_0 : i32, i32
  }
  func.func @transform_2(%arg0: i32) -> (i32, i32) {
    %c0_i32 = arith.constant 0 : i32
    %c0_i32_0 = arith.constant 0 : i32
    %c0_i32_1 = arith.constant 0 : i32
    return %c0_i32, %c0_i32_0 : i32, i32
  }
  func.func @transform_3(%arg0: i32) -> (i32, i32) {
    %c0_i32 = arith.constant 0 : i32
    %c0_i32_0 = arith.constant 0 : i32
    %c0_i32_1 = arith.constant 0 : i32
    return %c0_i32, %c0_i32_0 : i32, i32
  }
  func.func @transform_4(%arg0: i32) -> (i32, i32) {
    %c0_i32 = arith.constant 0 : i32
    %c0_i32_0 = arith.constant 0 : i32
    %c0_i32_1 = arith.constant 0 : i32
    return %c0_i32, %c0_i32_0 : i32, i32
  }
  func.func @transform_5(%arg0: i32) -> (i32, i32, i32) {
    %c0_i32 = arith.constant 0 : i32
    %c0_i32_0 = arith.constant 0 : i32
    %c0_i32_1 = arith.constant 0 : i32
    return %arg0, %c0_i32, %c0_i32_0 : i32, i32, i32
  }
}

</mosaic_0001>

<bundles_post_ra>
// kernel: resb_forward.1
= control target key start
LH: loop header
LB: loop body
LE: loop exit
PB: predicated region body
PF: predicated region fallthrough
CT: control target
= control target key end

     0   :  { %v437_v3 = vmov 0.0   ;;  %v438_v4 = vmov 6   ;;  %v439_v8 = vmov 0   ;;  %vm27_vm0 = vcmask 130048   ;;  %s450_s6 = smov 127   ;;  %s565_s0 = inlined_call_operand.vmem [shape: f32[1,16,256], index: 0, kind: input, shape index: {}]   ;;  %s566_s2 = inlined_call_operand.vmem [shape: f32[8,9], index: 2, kind: input, shape index: {}]   ;;  %s567_s1 = inlined_call_operand.vmem [shape: f32[8,16], index: 1, kind: input, shape index: {}]   ;;  %s568_s4 = inlined_call_operand.vmem [shape: f32[4,256], index: 4, kind: input, shape index: {}]   ;;  %s569_s3 = inlined_call_operand.vmem [shape: f32[16,24], index: 3, kind: input, shape index: {}]   ;;  %s570_s5 = inlined_call_operand.vmem [shape: f32[1,16,256], index: 5, kind: output, shape index: {}]  }
   0x1   :  { %v21_v0 = vld [vmem:[%s565_s0 + $0x8] sm:$0xff]  ;;  %v23_v1 = vld [vmem:[%s565_s0 + $0x18] sm:$0xff]  ;;  %v20_v2 = vld [vmem:[%s565_s0] sm:$0xff]  ;;  %95 = vmatprep.mubr.f32.mxu0 %v437_v3  ;;  %429 = vset.pattern.permute.xlu1 %v438_v4  ;;  %v440_v11 = vmov 2   ;;  %v441_v12 = vmov 3   ;;  %v442_v13 = vmov 5   ;;  %v111_v24 = vlaneseq }
   0x2   :  { %v405_v5 = vpack.c.bf16 %v23_v1, %v21_v0  ;;  %v22_v6 = vld [vmem:[%s565_s0 + $0x10] sm:$0xff]  ;;  %v106_v7 = vld [vmem:[%s566_s2] sm:$0xff]  ;;  %427 = vset.pattern.permute.xlu0 %v439_v8  ;;  %362 = vmatprep.mubr.f32.mxu1 %v437_v3  ;;  %v443_v14 = vmov 8   ;;  %v444_v15 = vmov 1   ;;  %v445_v16 = vmov 4   ;;  %s446_s0 = smov 112  }
   0x3   :  { %v407_v9 = vpack.c.bf16 %v22_v6, %v20_v2  ;;  %202 = vperm.xlu1 %429, %v106_v7   ;;  %188 = vperm.xlu0 %427, %v106_v7   ;;  %v26_v10 = vld [vmem:[%s567_s1] sm:$0xff]  ;;  %s447_s1 = smov 16   ;;  %v448_v23 = vmov 7   ;;  %v512_v27 = vshrl.u32 %v111_v24, 7  ;;  %v522_v39 = vand.u32 127, %v111_v24 }
   0x4   :  { %406 = vmatprep.subr.bf16.mxu0 %v405_v5  ;;  %410 = vmatprep.subr.bf16.mxu1 %v405_v5  ;;  %v24_v26 = vld [vmem:[%s568_s4] sm:$0xff]  ;;  %s449_s4 = smov 1   ;;  %vm291_vm14 = vcmask 195584  }
   0x5   :  { %408 = vmatpush1.bf16.msra.mxu0 %v407_v9  ;;  %412 = vmatpush1.bf16.msra.mxu1 %v407_v9  ;;  %vm25_vm1 = vcmp.ne.f32.partialorder %v24_v26, 0.0  ;;  %v119_v29 = vsub.s32 0, %v512_v27  ;;  %v123_v30 = vsub.s32 4, %v512_v27  ;;  %v146_v35 = vsub.s32 1, %v512_v27 }
   0x6   :  { %v516_v31 = vsel %vm25_vm1, 1, %v439_v8  ;;  %v150_v36 = vsub.s32 5, %v512_v27  ;;  %vm113_vm2 = vcmp.lt.s32.totalorder %v522_v39, 16  ;;  %vm141_vm5 = vcmp.lt.s32.totalorder %v522_v39, 112 }
   0x7   :  { %430 = vset.pattern.permute.xlu1 %v440_v11  ;;  %428 = vset.pattern.permute.xlu0 %v441_v12  ;;  %v120_v33 = vrot.slane %v516_v31, %v119_v29  ;;  %v124_v34 = vrot.slane %v516_v31, %v123_v30  ;;  %v147_v42 = vrot.slane %v516_v31, %v146_v35  ;;  %vm213_vm8 = vcmp.lt.s32.totalorder %v522_v39, 1 }
   0x8   :  { %402 = vmatmul.mubr.msk.f32.vlgmr.msra.gmra.mrb[0].mxu0 %vm27_vm0, %v26_v10  ;;  %239 = vperm.xlu1 %430, %v106_v7   ;;  %v151_v43 = vrot.slane %v516_v31, %v150_v36  ;;  %vm264_vm11 = vcmp.lt.s32.totalorder %v522_v39, 127  ;;  %v290_v39 = vld [vmem:[%s569_s3 + $0x8] sm:$0xff] }
   0x9   :  { %194 = vperm.xlu0 %428, %v106_v7   ;;  %v128_v40 = vrot.slane %v120_v33, %v119_v29  ;;  %v132_v41 = vrot.slane %v124_v34, %v119_v29  ;;  %v155_v46 = vrot.slane %v147_v42, %v146_v35  ;;  %v218_v33 = vsub.s32 2, %v512_v27 }
   0xa   :  { %v159_v47 = vrot.slane %v151_v43, %v146_v35  ;;  %v222_v34 = vsub.s32 6, %v512_v27 }
   0xb   :  { %vm133_vm3 = vcmp.eq.s32.totalorder %v128_v40, 1  ;;  %vm134_vm4 = vcmp.eq.s32.totalorder %v132_v41, 1  ;;  %vm160_vm6 = vcmp.eq.s32.totalorder %v155_v46, 1  ;;  %v219_v35 = vrot.slane %v516_v31, %v218_v33 }
   0xc   :  { %431 = vset.pattern.permute.xlu1 %v442_v13  ;;  %vm161_vm7 = vcmp.eq.s32.totalorder %v159_v47, 1  ;;  %v223_v36 = vrot.slane %v516_v31, %v222_v34 }
   0xd   :  { %245 = vperm.xlu1 %431, %v106_v7   ;;  %432 = vset.pattern.permute.xlu0 %v443_v14 }
   0xe   :  { %253 = vperm.xlu0 %432, %v106_v7  }
  0x11   :  { %434 = vset.pattern.permute.xlu1 %v445_v16 }
  0x12   :  { %433 = vset.pattern.permute.xlu0 %v444_v15 }
  0x82   :  { %v203_v25 = vpop.permute.xlu1 %202  ;;  %v189_v32 = vpop.permute.xlu0 %188 }
  0x87   :  { %v240_v28 = vpop.permute.xlu1 %239 }
  0x88   :  { %v195_v38 = vpop.permute.xlu0 %194 }
  0x8c   :  { %v246_v37 = vpop.permute.xlu1 %245 }
  0x8d   :  { %v254_v45 = vpop.permute.xlu0 %253 }
  0xdb   :  { %v97_v17 = vpop.f32.mrb[0].mxu0 }
  0xdc   :  { %v102_v18 = vmul.f32 0.1, %v97_v17  ;;  %v99_v19 = vpop.f32.mrb[1].mxu0 }
  0xdd   :  { %v103_v21 = vmul.f32 0.1, %v99_v19 }
  0xde   :  { %v501_v20 = vmax.f32 %v97_v17, %v102_v18 }
  0xdf   :  { %v505_v22 = vmax.f32 %v99_v19, %v103_v21 }
  0xe0   :  { %137 = vrot.lane.b32.xlu0 %v501_v20, %s446_s0  ;;  %107 = vrot.lane.b32.xlu1 %v501_v20, %s447_s1  ;;  %v197_v57 = vmul.f32 %v195_v38, %v501_v20  ;;  %v248_v6 = vmul.f32 %v246_v37, %v501_v20 }
  0xe1   :  { %v198_v58 = vmul.f32 %v195_v38, %v505_v22  ;;  %v231_v38 = vrot.slane %v223_v36, %v218_v33 }
  0xe3   :  { %vm233_vm10 = vcmp.eq.s32.totalorder %v231_v38, 1 }
  0xe4   :  { %166 = vperm.xlu0 %433, %v106_v7   ;;  %109 = vrot.lane.b32.xlu1 %v505_v22, %s447_s1 }
  0xe8   :  { %139 = vrot.lane.b32.xlu1 %v505_v22, %s446_s0  ;;  %436 = vset.pattern.permute.xlu0 %v443_v14 }
  0xec   :  { %172 = vperm.xlu1 %434, %v106_v7  }
  0xf0   :  { %435 = vset.pattern.permute.xlu1 %v448_v23 }
  0xf1   :  { %180 = vperm.xlu1 %435, %v106_v7   ;;  %v249_v7 = vmul.f32 %v246_v37, %v505_v22  ;;  %v227_v37 = vrot.slane %v219_v35, %v218_v33 }
  0xf3   :  { %vm232_vm9 = vcmp.eq.s32.totalorder %v227_v37, 1 }
 0x152   :  { %v108_v44 = vpop.permute.xlu1 %107  ;;  %v138_v55 = vpop.permute.xlu0 %137 }
 0x156   :  { %v110_v48 = vpop.permute.xlu1 %109 }
 0x157   :  { %v114_v49 = vsel %vm113_vm2, %v108_v44, %v110_v48  ;;  %v115_v50 = vsel %vm113_vm2, %v110_v48, %v108_v44 }
 0x158   :  { %v135_v51 = vsel %vm133_vm3, %v115_v50, 0.0  ;;  %v136_v52 = vsel %vm134_vm4, %v114_v49, 0.0 }
 0x159   :  { %v191_v53 = vmul.f32 %v189_v32, %v135_v51  ;;  %v192_v54 = vmul.f32 %v189_v32, %v136_v52  ;;  %v242_v61 = vmul.f32 %v240_v28, %v135_v51  ;;  %v243_v62 = vmul.f32 %v240_v28, %v136_v52 }
 0x15a   :  { %v140_v56 = vpop.permute.xlu1 %139 }
 0x15b   :  { %v142_v59 = vsel %vm141_vm5, %v138_v55, %v140_v56  ;;  %v143_v60 = vsel %vm141_vm5, %v140_v56, %v138_v55  ;;  %v199_v4 = vadd.f32 %v197_v57, %v191_v53  ;;  %v200_v5 = vadd.f32 %v198_v58, %v192_v54 }
 0x15c   :  { %v162_v63 = vsel %vm160_vm6, %v142_v59, 0.0  ;;  %v163_v0 = vsel %vm161_vm7, %v143_v60, 0.0  ;;  %v250_v12 = vadd.f32 %v248_v6, %v242_v61  ;;  %v251_v13 = vadd.f32 %v249_v7, %v243_v62  ;;  %v289_v59 = vld [vmem:[%s569_s3] sm:$0xff] }
 0x15d   :  { %v205_v1 = vmul.f32 %v203_v25, %v162_v63  ;;  %v206_v2 = vmul.f32 %v203_v25, %v163_v0  ;;  %v256_v8 = vmul.f32 %v254_v45, %v162_v63  ;;  %v257_v9 = vmul.f32 %v254_v45, %v163_v0 }
 0x15e   :  { %v378_v60 = vand.u32 1, %v512_v27  ;;  %v377_v61 = vadd.s32 8, %v512_v27 }
 0x15f   :  { %v207_v10 = vadd.f32 %v205_v1, %v199_v4  ;;  %v208_v11 = vadd.f32 %v206_v2, %v200_v5  ;;  %v258_v14 = vadd.f32 %v256_v8, %v250_v12  ;;  %v259_v15 = vadd.f32 %v257_v9, %v251_v13 }
 0x160   :  { %vm380_vm15 = vcmp.eq.s32.totalorder %v378_v60, 1  ;;  %v379_v2 = vand.u32 1, %v377_v61 }
 0x161   :  { %209 = vrot.lane.b32.xlu0 %v207_v10, %s449_s4  ;;  %211 = vrot.lane.b32.xlu1 %v208_v11, %s449_s4 }
 0x162   :  { %vm381_vm0 = vcmp.eq.s32.totalorder %v379_v2, 1 }
 0x163   :  { %v167_v17 = vpop.permute.xlu0 %166 }
 0x164   :  { %v169_v21 = vmul.f32 %v167_v17, %v135_v51  ;;  %v170_v23 = vmul.f32 %v167_v17, %v136_v52 }
 0x165   :  { %260 = vrot.lane.b32.xlu0 %v258_v14, %s450_s6  ;;  %262 = vrot.lane.b32.xlu1 %v259_v15, %s450_s6 }
 0x16b   :  { %v173_v16 = vpop.permute.xlu1 %172 }
 0x16c   :  { %v175_v18 = vmul.f32 %v173_v16, %v501_v20  ;;  %v176_v19 = vmul.f32 %v173_v16, %v505_v22  ;;  %v269_v20 = vsub.s32 3, %v512_v27  ;;  %v273_v22 = vsub.s32 7, %v512_v27 }
 0x16e   :  { %v177_v25 = vadd.f32 %v175_v18, %v169_v21  ;;  %v178_v26 = vadd.f32 %v176_v19, %v170_v23  ;;  %v270_v40 = vrot.slane %v516_v31, %v269_v20  ;;  %v274_v41 = vrot.slane %v516_v31, %v273_v22 }
 0x170   :  { %v181_v24 = vpop.permute.xlu1 %180  ;;  %v278_v42 = vrot.slane %v270_v40, %v269_v20  ;;  %v282_v43 = vrot.slane %v274_v41, %v269_v20 }
 0x171   :  { %v183_v28 = vmul.f32 %v181_v24, %v162_v63  ;;  %v184_v29 = vmul.f32 %v181_v24, %v163_v0 }
 0x172   :  { %vm283_vm12 = vcmp.eq.s32.totalorder %v278_v42, 1  ;;  %vm284_vm13 = vcmp.eq.s32.totalorder %v282_v43, 1 }
 0x173   :  { %v185_v30 = vadd.f32 %v183_v28, %v177_v25  ;;  %v186_v32 = vadd.f32 %v184_v29, %v178_v26 }
 0x1d3   :  { %v210_v44 = vpop.permute.xlu0 %209  ;;  %v212_v45 = vpop.permute.xlu1 %211 }
 0x1d4   :  { %v214_v46 = vsel %vm213_vm8, %v210_v44, %v212_v45  ;;  %v215_v47 = vsel %vm213_vm8, %v212_v45, %v210_v44 }
 0x1d5   :  { %v234_v48 = vsel %vm232_vm9, %v215_v47, 0.0  ;;  %v235_v49 = vsel %vm233_vm10, %v214_v46, 0.0 }
 0x1d6   :  { %v236_v52 = vadd.f32 %v234_v48, %v185_v30  ;;  %v237_v31 = vadd.f32 %v235_v49, %v186_v32 }
 0x1d7   :  { %v261_v50 = vpop.permute.xlu0 %260  ;;  %v263_v51 = vpop.permute.xlu1 %262 }
 0x1d8   :  { %v265_v53 = vsel %vm264_vm11, %v261_v50, %v263_v51  ;;  %v266_v54 = vsel %vm264_vm11, %v263_v51, %v261_v50 }
 0x1d9   :  { %v285_v55 = vsel %vm283_vm12, %v265_v53, 0.0  ;;  %v286_v56 = vsel %vm284_vm13, %v266_v54, 0.0 }
 0x1da   :  { %v287_v57 = vadd.f32 %v285_v55, %v236_v52  ;;  %v288_v58 = vadd.f32 %v286_v56, %v237_v31 }
 0x1dc   :  { %302 = vmatprep.subr.mxu1 %v288_v58 }
 0x1dd   :  { %303 = vmatpush1.msra.mxu1 %v287_v57 }
 0x1de   :  { %403 = vmatmul.mubr.msk.f32.vlgmr.msra.gmra.mrb[0].mxu1 %vm291_vm14, %v289_v59 }
 0x1df   :  { %368 = vmatprep.mubr.f32.mxu1 %v437_v3 }
 0x1e2   :  { %404 = vmatmul.mubr.msk.f32.gmra.mrb[2].mxu1 %vm291_vm14, %v290_v39 }
 0x2b1   :  { %v364_v62 = vpop.f32.mrb[0].mxu1 }
 0x2b2   :  { %v382_v63 = vmul.f32 0.1, %v364_v62  ;;  %v366_v0 = vpop.f32.mrb[1].mxu1 }
 0x2b3   :  { %v383_v1 = vmul.f32 0.1, %v366_v0 }
 0x2b4   :  { %v386_v4 = vmax.f32 %v364_v62, %v382_v63 }
 0x2b5   :  { %v387_v5 = vmax.f32 %v366_v0, %v383_v1  ;;  %v370_v6 = vpop.f32.mrb[2].mxu1 }
 0x2b6   :  { %v390_v7 = vsel %vm380_vm15, %v386_v4, %v364_v62  ;;  %v384_v3 = vmul.f32 0.1, %v370_v6  ;;  %v372_v8 = vpop.f32.mrb[3].mxu1 }
 0x2b7   :  { %394 = vst [vmem:[%s570_s5] sm:$0xff] %v390_v7  ;;  %v391_v9 = vsel %vm380_vm15, %v387_v5, %v366_v0  ;;  %v385_v10 = vmul.f32 0.1, %v372_v8 }
 0x2b8   :  { %395 = vst [vmem:[%s570_s5 + $0x8] sm:$0xff] %v391_v9  ;;  %v388_v27 = vmax.f32 %v370_v6, %v384_v3 }
 0x2b9   :  { %v389_v11 = vmax.f32 %v372_v8, %v385_v10 }
 0x2ba   :  { %v392_v12 = vsel %vm381_vm0, %v388_v27, %v370_v6 }
 0x2bb   :  { %396 = vst [vmem:[%s570_s5 + $0x10] sm:$0xff] %v392_v12  ;;  %v393_v13 = vsel %vm381_vm0, %v389_v11, %v372_v8 }
 0x2bc   :  { %397 = vst [vmem:[%s570_s5 + $0x18] sm:$0xff] %v393_v13 }

</bundles_post_ra>
